<compile_context>
chip_gen: v6e
topology: v6e:2x2x1
jax: 0.10.0
libtpu: 0.0.40
codegen_flags: <defaults>
</compile_context>

<pallas_src>
import functools

import jax
import jax.numpy as jnp
from jax.experimental import pallas as pl
from jax.experimental.pallas import tpu as pltpu

EPS = 1e-10
_LANE = 128


def _round_up(x, m):
    return ((x + m - 1) // m) * m


def _round_down(x, m):
    return (x // m) * m


def _tile_loss(rep, repc):
    """NCAD per-row loss for a (TN, D) tile, returned lane-oriented as (1, TN) f32."""
    diff = rep.astype(jnp.float32) - repc.astype(jnp.float32)        # (TN, D) VPU
    # Row-wise sum of squares via a cross-lane reduce (XLU) — replaces the previous
    # degenerate ones-row MXU dot.  The single relayout to a lane-major vector keeps
    # the transcendentals on dense vregs.
    dist = jnp.sum(diff * diff, axis=-1)[None, :]                    # (1, TN)
    # loss = log(clip(1 - exp(-dist), eps, 1)) - (-dist)
    prob_different = jnp.clip(1.0 - jnp.exp(-dist), EPS, 1.0)
    return jnp.log(prob_different) + dist                            # (1, TN)


def _none_kernel(rep_ref, repc_ref, out_ref):
    # Lane-dense store: out block is (1, 1, block_rows).
    out_ref[...] = _tile_loss(rep_ref[...], repc_ref[...])[None]


def _reduce_kernel(rep_ref, repc_ref, out_ref, *, n_rows, block_rows, tiles_per_group):
    i = pl.program_id(0)          # partial-sum group (megacore split on v7x)
    j = pl.program_id(1)          # tile within group (reduction axis)

    @pl.when(j == 0)
    def _():
        out_ref[...] = jnp.zeros_like(out_ref)

    loss = _tile_loss(rep_ref[...], repc_ref[...])                   # (1, TN)

    # Mask rows past the end of the batch: the partial last tile and any duplicated
    # clamped tail tile (logical tile id >= n_tiles) contribute zero.  Pallas edge
    # blocks keep their un-clamped start offset, so logical-index masking is aligned.
    t = i * tiles_per_group + j
    col = jax.lax.broadcasted_iota(jnp.int32, (1, block_rows), 1)
    loss = jnp.where(t * block_rows + col < n_rows, loss, 0.0)

    # Lane-dense VPU accumulation into the VMEM-resident output block; the final
    # cross-lane sum over (num_groups, block_rows) values happens in the wrapper.
    out_ref[...] = out_ref[...] + loss[None]


def ncad_loss(rep, repc, reduction="mean", block_rows=None):
    """Pallas TPU implementation of NCADLoss.forward(rep, repc)."""
    assert rep.shape == repc.shape and rep.ndim == 2
    if reduction not in ("none", "mean", "sum"):
        raise ValueError(f"unknown reduction {reduction!r}")

    N, D = rep.shape
    itemsize = jnp.dtype(rep.dtype).itemsize
    sub = {4: 8, 2: 16, 1: 32}.get(itemsize, 8)          # sublane packing per dtype
    padded_row_bytes = _round_up(D, _LANE) * itemsize     # VMEM pads lanes to 128

    if block_rows is None:
        # ~6 MiB (padded) per pipeline buffer -> 2 inputs x 2 buffers ~ 24 MiB plus the
        # small output block; kept under the explicit vmem_limit below on all gens.
        per_buffer_budget = 6 << 20
        blk = max(per_buffer_budget // padded_row_bytes, sub)
        if blk >= N:
            block_rows = N
        elif blk >= _LANE:
            block_rows = _round_down(blk, _LANE)          # lane-dense output stores
        else:
            block_rows = _round_down(blk, sub)
    block_rows = min(block_rows, N)
    assert block_rows == N or block_rows % sub == 0, (
        f"block_rows={block_rows} must be a multiple of {sub} for dtype {rep.dtype}")

    n_tiles = pl.cdiv(N, block_rows)
    in_block = (block_rows, D)

    # Explicit scoped-VMEM budget from the *padded* footprint (2 inputs x 2 pipeline
    # buffers + double-buffered output block), capped at 48 MiB for v7x's 64 MiB TC.
    in_tile_bytes = block_rows * padded_row_bytes
    out_tile_bytes = block_rows * 4
    footprint = 2 * 2 * in_tile_bytes + 2 * out_tile_bytes
    vmem_limit = int(min(48 << 20, max(footprint + (2 << 20), 16 << 20)))

    if reduction == "none":
        out = pl.pallas_call(
            _none_kernel,
            out_shape=jax.ShapeDtypeStruct((n_tiles, 1, block_rows), jnp.float32),
            grid_spec=pltpu.PrefetchScalarGridSpec(
                num_scalar_prefetch=0,
                grid=(n_tiles,),
                in_specs=[pl.BlockSpec(in_block, lambda i: (i, 0)),
                          pl.BlockSpec(in_block, lambda i: (i, 0))],
                out_specs=pl.BlockSpec((1, 1, block_rows), lambda i: (i, 0, 0)),
            ),
            compiler_params=pltpu.CompilerParams(
                dimension_semantics=("parallel",),
                vmem_limit_bytes=vmem_limit),
        )(rep, repc)
        # Tail of the last tile is garbage; sliced off here (never reduced over).
        return out.reshape(-1)[:N]

    # 'mean' / 'sum': two partial-sum groups along a 'parallel' outer grid axis so
    # both v7x TensorCores share the reduction — but only when each core gets at
    # least 2 real tiles; on 1-TC v5e/v6e the outer axis just iterates.
    num_groups = 2 if n_tiles >= 4 else 1
    tiles_per_group = pl.cdiv(n_tiles, num_groups)

    def in_map(i, j):
        # Clamp duplicated tail tiles (when n_tiles % num_groups != 0) in-bounds;
        # their rows are fully masked inside the kernel.
        return (jnp.minimum(i * tiles_per_group + j, n_tiles - 1), 0)

    kernel = functools.partial(
        _reduce_kernel, n_rows=N, block_rows=block_rows,
        tiles_per_group=tiles_per_group)

    partials = pl.pallas_call(
        kernel,
        out_shape=jax.ShapeDtypeStruct((num_groups, 1, block_rows), jnp.float32),
        grid_spec=pltpu.PrefetchScalarGridSpec(
            num_scalar_prefetch=0,
            grid=(num_groups, tiles_per_group),
            in_specs=[pl.BlockSpec(in_block, in_map),
                      pl.BlockSpec(in_block, in_map)],
            # One VMEM-resident lane-dense accumulator block per group.
            out_specs=pl.BlockSpec((1, 1, block_rows), lambda i, j: (i, 0, 0)),
        ),
        compiler_params=pltpu.CompilerParams(
            dimension_semantics=("parallel", "arbitrary"),
            vmem_limit_bytes=vmem_limit),
    )(rep, repc)

    total = jnp.sum(partials)     # tiny final reduce in plain XLA
    return total / N if reduction == "mean" else total


def _reference(rep, repc, reduction="mean"):
    dist = jnp.sum((rep.astype(jnp.float32) - repc.astype(jnp.float32)) ** 2, axis=1)
    prob_different = jnp.clip(1.0 - jnp.exp(-dist), EPS, 1.0)
    loss = jnp.log(prob_different) + dist
    if reduction == "mean":
        return jnp.mean(loss)
    if reduction == "sum":
        return jnp.sum(loss)
    return loss


if __name__ == "__main__":
    key = jax.random.PRNGKey(0)
    k1, k2, k3, k4, k5, k6 = jax.random.split(key, 6)

    # Small NCAD-style embeddings: (batch, hidden).
    N, D = 16, 32
    rep = jax.random.normal(k1, (N, D), dtype=jnp.float32)
    repc = rep + 0.1 * jax.random.normal(k2, (N, D), dtype=jnp.float32)

    out_mean = jax.block_until_ready(ncad_loss(rep, repc, reduction="mean"))
    out_sum = jax.block_until_ready(ncad_loss(rep, repc, reduction="sum"))
    out_none = jax.block_until_ready(ncad_loss(rep, repc, reduction="none"))

    assert jnp.allclose(out_mean, _reference(rep, repc, "mean"), atol=1e-5, rtol=1e-5)
    assert jnp.allclose(out_sum, _reference(rep, repc, "sum"), atol=1e-4, rtol=1e-5)
    assert jnp.allclose(out_none, _reference(rep, repc, "none"), atol=1e-5, rtol=1e-5)

    # Multi-tile + masked partial tail (batch does not divide the row tile).
    N2, D2 = 20, 32
    rep2 = jax.random.normal(k3, (N2, D2), dtype=jnp.float32)
    repc2 = rep2 + 0.1 * jax.random.normal(k4, (N2, D2), dtype=jnp.float32)

    out_mean2 = jax.block_until_ready(ncad_loss(rep2, repc2, "mean", block_rows=8))
    out_sum2 = jax.block_until_ready(ncad_loss(rep2, repc2, "sum", block_rows=8))
    out_none2 = jax.block_until_ready(ncad_loss(rep2, repc2, "none", block_rows=8))

    assert jnp.allclose(out_mean2, _reference(rep2, repc2, "mean"), atol=1e-5, rtol=1e-5)
    assert jnp.allclose(out_sum2, _reference(rep2, repc2, "sum"), atol=1e-4, rtol=1e-5)
    assert jnp.allclose(out_none2, _reference(rep2, repc2, "none"), atol=1e-5, rtol=1e-5)

    # Two-group (megacore) reduction path with a clamped, fully-masked duplicate tile
    # (n_tiles = 5 -> groups of 3, logical tile 5 is out of range).
    N3, D3 = 40, 32
    rep3 = jax.random.normal(k5, (N3, D3), dtype=jnp.float32)
    repc3 = rep3 + 0.1 * jax.random.normal(k6, (N3, D3), dtype=jnp.float32)

    out_mean3 = jax.block_until_ready(ncad_loss(rep3, repc3, "mean", block_rows=8))
    out_sum3 = jax.block_until_ready(ncad_loss(rep3, repc3, "sum", block_rows=8))

    assert jnp.allclose(out_mean3, _reference(rep3, repc3, "mean"), atol=1e-5, rtol=1e-5)
    assert jnp.allclose(out_sum3, _reference(rep3, repc3, "sum"), atol=1e-4, rtol=1e-5)

    # bf16 embeddings (upcast to f32 inside the kernel; sublane packing = 16).
    rep_bf = rep.astype(jnp.bfloat16)
    repc_bf = repc.astype(jnp.bfloat16)
    out_bf = jax.block_until_ready(ncad_loss(rep_bf, repc_bf, "mean"))
    assert jnp.allclose(out_bf, _reference(rep_bf, repc_bf, "mean"), atol=1e-4, rtol=1e-4)

    print("KERNEL_OK")
</pallas_src>

<mosaic_0001>
module attributes {stable_mosaic.version = 11 : i64} {
  func.func @_reduce_kernel(%arg0: i32, %arg1: i32, %arg2: memref<16x32xf32, #tpu.memory_space<vmem>>, %arg3: memref<16x32xf32, #tpu.memory_space<vmem>>, %arg4: memref<1x1x16xf32, #tpu.memory_space<vmem>>) attributes {dimension_semantics = [#tpu.dimension_semantics<parallel>, #tpu.dimension_semantics<arbitrary>], iteration_bounds = array<i64: 1, 1>, scalar_prefetch = 0 : i64, scratch_operands = 0 : i64, tpu.core_type = #tpu.core_type<tc>, window_params = [{transform_indices = @transform_0, window_bounds = array<i64: 16, 32>}, {transform_indices = @transform_1, window_bounds = array<i64: 16, 32>}, {transform_indices = @transform_2, window_bounds = array<i64: 1, 1, 16>}]} {
    %c0_i32 = arith.constant 0 : i32
    %0 = arith.cmpi eq, %arg1, %c0_i32 : i32
    %1 = arith.extui %0 : i1 to i32
    %c0_i32_0 = arith.constant 0 : i32
    %2 = arith.cmpi ne, %1, %c0_i32_0 : i32
    scf.if %2 {
      %cst_16 = arith.constant 0.000000e+00 : f32
      %34 = vector.broadcast %cst_16 : f32 to vector<1x1x16xf32>
      %c0_17 = arith.constant 0 : index
      %c0_18 = arith.constant 0 : index
      %c0_19 = arith.constant 0 : index
      %35 = vector.load %arg4[%c0_17, %c0_18, %c0_19] : memref<1x1x16xf32, #tpu.memory_space<vmem>>, vector<1x1x16xf32>
      tpu.vector_store %arg4[%c0_17, %c0_18, %c0_19], %34 {strides = array<i32>} : memref<1x1x16xf32, #tpu.memory_space<vmem>>, vector<1x1x16xf32>,
    } else {
    }
    %c0 = arith.constant 0 : index
    %c0_1 = arith.constant 0 : index
    %3 = vector.load %arg2[%c0, %c0_1] : memref<16x32xf32, #tpu.memory_space<vmem>>, vector<16x32xf32>
    %c0_2 = arith.constant 0 : index
    %c0_3 = arith.constant 0 : index
    %4 = vector.load %arg3[%c0_2, %c0_3] : memref<16x32xf32, #tpu.memory_space<vmem>>, vector<16x32xf32>
    %5 = arith.subf %3, %4 : vector<16x32xf32>
    %6 = arith.mulf %5, %5 : vector<16x32xf32>
    %cst = arith.constant dense<0.000000e+00> : vector<16xf32>
    %7 = vector.multi_reduction <add>, %6, %cst [1] : vector<16x32xf32> to vector<16xf32>
    %8 = vector.shape_cast %7 : vector<16xf32> to vector<1x16xf32>
    %cst_4 = arith.constant 0.000000e+00 : f32
    %9 = vector.broadcast %cst_4 : f32 to vector<1x16xf32>
    %10 = arith.subf %9, %8 : vector<1x16xf32>
    %11 = math.exp %10 : vector<1x16xf32>
    %cst_5 = arith.constant 1.000000e+00 : f32
    %12 = vector.broadcast %cst_5 : f32 to vector<1x16xf32>
    %13 = arith.subf %12, %11 : vector<1x16xf32>
    %cst_6 = arith.constant 1.000000e-10 : f32
    %cst_7 = arith.constant 1.000000e+00 : f32
    %14 = vector.broadcast %cst_6 : f32 to vector<1x16xf32>
    %15 = arith.maximumf %14, %13 : vector<1x16xf32>
    %16 = vector.broadcast %cst_7 : f32 to vector<1x16xf32>
    %17 = arith.minimumf %16, %15 : vector<1x16xf32>
    %18 = math.log %17 : vector<1x16xf32>
    %19 = arith.addf %18, %8 : vector<1x16xf32>
    %c1_i32 = arith.constant 1 : i32
    %20 = arith.muli %arg0, %c1_i32 : i32
    %21 = arith.addi %20, %arg1 : i32
    %22 = tpu.iota {dimensions = array<i32: 1>} : vector<1x16xi32>
    %c16_i32 = arith.constant 16 : i32
    %23 = arith.muli %21, %c16_i32 : i32
    %24 = vector.broadcast %23 : i32 to vector<1x16xi32>
    %25 = arith.addi %24, %22 : vector<1x16xi32>
    %c16_i32_8 = arith.constant 16 : i32
    %26 = vector.broadcast %c16_i32_8 : i32 to vector<1x16xi32>
    %27 = arith.cmpi slt, %25, %26 : vector<1x16xi32>
    %cst_9 = arith.constant 0.000000e+00 : f32
    %28 = vector.broadcast %cst_9 : f32 to vector<1x16xf32>
    %29 = arith.select %27, %19, %28 : vector<1x16xi1>, vector<1x16xf32>
    %c0_10 = arith.constant 0 : index
    %c0_11 = arith.constant 0 : index
    %c0_12 = arith.constant 0 : index
    %30 = vector.load %arg4[%c0_10, %c0_11, %c0_12] : memref<1x1x16xf32, #tpu.memory_space<vmem>>, vector<1x1x16xf32>
    %31 = vector.shape_cast %29 : vector<1x16xf32> to vector<1x1x16xf32>
    %32 = arith.addf %30, %31 : vector<1x1x16xf32>
    %c0_13 = arith.constant 0 : index
    %c0_14 = arith.constant 0 : index
    %c0_15 = arith.constant 0 : index
    %33 = vector.load %arg4[%c0_13, %c0_14, %c0_15] : memref<1x1x16xf32, #tpu.memory_space<vmem>>, vector<1x1x16xf32>
    tpu.vector_store %arg4[%c0_13, %c0_14, %c0_15], %32 {strides = array<i32>} : memref<1x1x16xf32, #tpu.memory_space<vmem>>, vector<1x1x16xf32>,
    return
  }
  func.func @transform_0(%arg0: i32, %arg1: i32) -> (i32, i32) {
    %c1_i32 = arith.constant 1 : i32
    %0 = arith.muli %arg0, %c1_i32 : i32
    %1 = arith.addi %0, %arg1 : i32
    %c0_i32 = arith.constant 0 : i32
    %2 = arith.minsi %1, %c0_i32 : i32
    %c0_i32_0 = arith.constant 0 : i32
    %c0_i32_1 = arith.constant 0 : i32
    return %2, %c0_i32_0 : i32, i32
  }
  func.func @transform_1(%arg0: i32, %arg1: i32) -> (i32, i32) {
    %c1_i32 = arith.constant 1 : i32
    %0 = arith.muli %arg0, %c1_i32 : i32
    %1 = arith.addi %0, %arg1 : i32
    %c0_i32 = arith.constant 0 : i32
    %2 = arith.minsi %1, %c0_i32 : i32
    %c0_i32_0 = arith.constant 0 : i32
    %c0_i32_1 = arith.constant 0 : i32
    return %2, %c0_i32_0 : i32, i32
  }
  func.func @transform_2(%arg0: i32, %arg1: i32) -> (i32, i32, i32) {
    %c0_i32 = arith.constant 0 : i32
    %c0_i32_0 = arith.constant 0 : i32
    %c0_i32_1 = arith.constant 0 : i32
    return %arg0, %c0_i32, %c0_i32_0 : i32, i32, i32
  }
}

</mosaic_0001>

<bundles_post_ra>
// kernel: tpu_custom_call.1
= control target key start
LH: loop header
LB: loop body
LE: loop exit
PB: predicated region body
PF: predicated region fallthrough
CT: control target
= control target key end

     0   :  { %7 = vsyncpa [#allocation3], 0  ;;  %s257_s0 = inlined_call_operand.hbm [shape: f32[16,32], index: 0, kind: input, shape index: {}]   ;;  %s258_s1 = inlined_call_operand.hbm [shape: f32[16,32], index: 1, kind: input, shape index: {}]   ;;  %s259_s2 = inlined_call_operand.hbm [shape: f32[1,1,16], index: 2, kind: output, shape index: {}]  }
   0x1   :  { %8 = vsyncpa [#allocation6], 0 }
   0x2   :  { %9 = vsyncpa [#allocation4], 0  ;;  %s225_s9 = smov [#allocation2]  }
   0x3   :  { %s21_s10 = sshll.u32 %s225_s9, 4  ;;  %s22_s10 = int_to_ptr.vmem [resolvable:$true] %s21_s10 }
   0x4   :  { %s167_s11 = scalar_lea.vmem %s22_s10, 256  ;;  %p172_p1 = scmp.lt.s32.totalorder %s22_s10, %s22_s10 }
   0x5   :  { %p168_p0 = scmp.ne.s32.totalorder %s22_s10, %s167_s11  ;;  %p173_p2 = scmp.lt.s32.totalorder %s167_s11, %s167_s11 }
   0x7   :  { %p174_p3 = por %p173_p2, %p172_p1 }
   0x9   :  { %p175_p4 = pnand %p174_p3, %p168_p0 }
   0xb   :  { %178 = shalt.err (!%p175_p4)
}
   0xc   :  { %s226_s12 = smov 128   ;;  %s227_s13 = smov 8  }
   0xd   :  { %27 = dma.hbm_to_vmem [thread:$0]  %s257_s0, 256, %s22_s10, [#allocation3], %s226_s12, %s226_s12, %s227_s13  }
   0xe   :  { %s228_s16 = smov [#allocation5]  }
   0xf   :  { %s39_s17 = sshll.u32 %s228_s16, 4  ;;  %s40_s17 = int_to_ptr.vmem [resolvable:$true] %s39_s17 }
  0x10   :  { %s187_s18 = scalar_lea.vmem %s40_s17, 256  ;;  %p192_p6 = scmp.lt.s32.totalorder %s40_s17, %s40_s17 }
  0x11   :  { %p188_p5 = scmp.ne.s32.totalorder %s40_s17, %s187_s18  ;;  %p193_p7 = scmp.lt.s32.totalorder %s187_s18, %s187_s18 }
  0x13   :  { %p194_p8 = por %p193_p7, %p192_p6 }
  0x15   :  { %p195_p9 = pnand %p194_p8, %p188_p5 }
  0x17   :  { %198 = shalt.err (!%p195_p9)
}
  0x18   :  { %45 = dma.hbm_to_vmem [thread:$0]  %s258_s1, 256, %s40_s17, [#allocation6], %s226_s12, %s226_s12, %s227_s13  }
  0x19   :  { %219 = dma.done.wait [#allocation3], 256  }
  0x1a   :  { %220 = vsyncadd [#allocation3], 4294967040 }
  0x1b   :  { %221 = dma.done.wait [#allocation6], 256  }
  0x1c   :  { %222 = vsyncadd [#allocation6], 4294967040  ;;  %v66_v0 = vld [vmem:[#allocation2] sm:$0xff]  ;;  %v68_v1 = vld [vmem:[#allocation5] sm:$0xff]  ;;  %vm74_vm0 = vcmask 261120   ;;  %vm64_vm1 = vcmask 122880   ;;  %v100_v25 = vlaneseq }
  0x1d   :  { %v67_v2 = vld [vmem:[#allocation2 + $0x8] sm:$0xff]  ;;  %v70_v3 = vsub.f32 %v66_v0, %v68_v1  ;;  %v69_v4 = vld [vmem:[#allocation5 + $0x8] sm:$0xff]  ;;  %v229_v10 = vmov 0.0   ;;  %vm117_vm2 = vcmask 130112   ;;  %s230_s0 = smov [#allocation7]  }
  0x1e   :  { %v71_v5 = vsub.f32 %v67_v2, %v69_v4  ;;  %65 = vst.msk [vmem:[#allocation7] sm:$0x1] %vm64_vm1, %v229_v10  ;;  %v101_v26 = vand.u32 127, %v100_v25  ;;  %v109_v28 = vshrl.u32 %v100_v25, 7  ;;  %s131_s1 = sshll.u32 %s230_s0, 4  ;;  %s132_s1 = int_to_ptr.vmem [resolvable:$true] %s131_s1 }
  0x1f   :  { %v72_v6 = vmul.f32 %v70_v3, %v70_v3  ;;  %s199_s21 = scalar_lea.vmem %s132_s1, 16  ;;  %s203_s22 = scalar_lea.vmem %s132_s1, 32 }
  0x20   :  { %v73_v7 = vmul.f32 %v71_v5, %v71_v5  ;;  %v112_v30 = vadd.s32 4294967288, %v101_v26  ;;  %v110_v32 = vsub.s32 %v101_v26, %v109_v28  ;;  %vm105_vm3 = vcmp.lt.s32.totalorder %v101_v26, 16  ;;  %p200_p10 = scmp.ne.s32.totalorder %s132_s1, %s199_s21  ;;  %p204_p11 = scmp.lt.s32.totalorder %s132_s1, %s132_s1 }
  0x21   :  { %v75_v8 = vsel %vm74_vm0, %v72_v6, 0.0  ;;  %p205_p12 = scmp.lt.s32.totalorder %s203_s22, %s199_s21 }
  0x22   :  { %76 = vadd.xlane.f32.xlu0 %v75_v8  ;;  %v78_v9 = vsel %vm74_vm0, %v73_v7, 0.0  ;;  %v115_v34 = vsub.s32 %v112_v30, %v109_v28 }
  0x23   :  { %p206_p13 = por %p205_p12, %p204_p11 }
  0x25   :  { %v121_v39 = vld [vmem:[#allocation7] sm:$0x1]  ;;  %p207_p0 = pnand %p206_p13, %p200_p10 }
  0x26   :  { %79 = vadd.xlane.f32.xlu0 %v78_v9 }
  0xab   :  { %v77_v11 = vpop.xlane.xlu0 %76 }
  0xac   :  { %v81_v12 = vsub.f32 0.0, %v77_v11 }
  0xae   :  { %v83_v13 = vmul.f32 1.442695, %v81_v12 }
  0xaf   :  { %v80_v14 = vpop.xlane.xlu0 %79 }
  0xb0   :  { %151 = vpow2.f32 %v83_v13  ;;  %v82_v15 = vsub.f32 0.0, %v80_v14 }
  0xb2   :  { %v85_v16 = vmul.f32 1.442695, %v82_v15 }
  0xb4   :  { %153 = vpow2.f32 %v85_v16 }
  0xbd   :  { %v152_v17 = vpop.eup %151 }
  0xbe   :  { %v87_v18 = vsub.f32 1.0, %v152_v17 }
  0xc0   :  { %v89_v19 = vmax.f32 %v87_v18, 1e-10 }
  0xc1   :  { %v154_v20 = vpop.eup %153 }
  0xc2   :  { %v91_v21 = vmin.f32 %v89_v19, 1.0  ;;  %v88_v22 = vsub.f32 1.0, %v154_v20 }
  0xc4   :  { %155 = vlog2.f32 %v91_v21  ;;  %v90_v23 = vmax.f32 %v88_v22, 1e-10 }
  0xc6   :  { %v92_v24 = vmin.f32 %v90_v23, 1.0 }
  0xc8   :  { %157 = vlog2.f32 %v92_v24 }
  0xd1   :  { %v156_v27 = vpop.eup %155 }
  0xd2   :  { %v94_v29 = vmul.f32 0.6931472, %v156_v27 }
  0xd4   :  { %v97_v33 = vadd.f32 %v94_v29, %v77_v11 }
  0xd5   :  { %v158_v31 = vpop.eup %157 }
  0xd6   :  { %v96_v35 = vmul.f32 0.6931472, %v158_v31  ;;  %v111_v37 = vrot.slane %v97_v33, %v110_v32 }
  0xd8   :  { %v98_v36 = vadd.f32 %v96_v35, %v80_v14 }
  0xda   :  { %v116_v38 = vrot.slane %v98_v36, %v115_v34 }
  0xdc   :  { %v118_v40 = vsel %vm117_vm2, %v116_v38, %v111_v37 }
  0xdd   :  { %v120_v41 = vsel %vm105_vm3, %v118_v40, 0.0 }
  0xde   :  { %v122_v42 = vadd.f32 %v121_v39, %v120_v41 }
  0xe0   :  { %124 = vst.msk [vmem:[#allocation7] sm:$0x1] %vm64_vm1, %v122_v42 }
  0xe1   :  { %210 = shalt.err (!%p207_p0)
}
  0xe2   :  { %134 = dma.vmem_to_hbm [thread:$0]  %s132_s1, 16, %s259_s2, [#allocation4]  }
  0xe3   :  { %223 = dma.done.wait [#allocation4], 16  }
  0xe4   :  { %224 = vsyncadd [#allocation4], 4294967280 }
  0xe5   :  { %138 = vsyncpa [#allocation3], 1 }
  0xe6   :  { %139 = vsyncpa [#allocation6], 1 }
  0xe7   :  { %140 = vsyncpa [#allocation4], 1 }

</bundles_post_ra>
